<compile_context>
chip_gen: v7x
topology: tpu7x:2x2x1
jax: 0.10.0
libtpu: 0.0.40
codegen_flags: <defaults>
</compile_context>

<pallas_src>
import jax
import jax.numpy as jnp
from jax.experimental import pallas as pl
from jax.experimental.pallas import tpu as pltpu


# ----------------------------- kernel ---------------------------------------

def mem_net_kernel(inp_ref, mem_ref, mem_t_ref, out_ref):
    inp = inp_ref[...]       # (bt, d)   query rows for this grid step
    mem = mem_ref[...]       # (d, m)    memory, resident across steps
    mem_t = mem_t_ref[...]   # (m, d)    memory transposed (wrapper-side, tiny)

    # scores = inp @ mem -> (bt, m); MXU with f32 accumulation.
    scores = jnp.dot(inp, mem, preferred_element_type=jnp.float32)

    # Row-wise softmax over the memory axis (== nn.Softmax() on a 2D tensor).
    # Exact f32 divide: the kernel is HBM-bound, so this costs nothing on the
    # wall clock and keeps numerics within a few ulp of jax.nn.softmax.
    s_max = jnp.max(scores, axis=-1, keepdims=True)
    e = jnp.exp(scores - s_max)
    denom = jnp.sum(e, axis=-1, keepdims=True)
    p = e / denom                                   # (bt, m), f32

    # output = softmax(scores) @ mem.T, as a canonical (bt,m)x(m,d) dot.
    out = jnp.dot(p, mem_t, preferred_element_type=jnp.float32)
    out_ref[...] = out.astype(out_ref.dtype)


# ----------------------------- wrapper ---------------------------------------

# (bt, 32) f32 block = 1 MiB at bt=8192; in + out, double-buffered, ~4 MiB —
# well under the default scoped VMEM on v5e (16 MiB) / v6e / v7x (32 MiB).
_MAX_BLOCK_ROWS = 8192
# Below this batch size the Pallas launch + per-step DMA overhead dominates;
# let XLA fuse the two tiny matmuls instead.
_PALLAS_MIN_BATCH = 64


def _round_up(x, mult):
    return ((x + mult - 1) // mult) * mult


def _choose_block_rows(B):
    """Largest tile that fits comfortably in VMEM, >= 2 grid steps when B allows."""
    if B <= 8:
        return 8
    n_blocks = max(2, -(-B // _MAX_BLOCK_ROWS))        # >=2 steps -> megacore on v7x
    return min(_MAX_BLOCK_ROWS, _round_up(-(-B // n_blocks), 8))


def _mem_net_xla(inp_vector, mem_vectors):
    scores = inp_vector @ mem_vectors
    p = jax.nn.softmax(scores, axis=1)
    return (mem_vectors @ p.T).T


def _mem_net_pallas(inp_vector, mem_vectors):
    B, d = inp_vector.shape
    _, m = mem_vectors.shape

    bt = _choose_block_rows(B)
    n_blocks = -(-B // bt)
    B_pad = n_blocks * bt

    inp_p = inp_vector
    if B_pad != B:
        # Padded rows see all-zero scores -> uniform softmax; no NaNs. Sliced off below.
        inp_p = jnp.pad(inp_vector, ((0, B_pad - B), (0, 0)))

    mem_t = mem_vectors.T   # (m, d), ~1 KiB; keeps both in-kernel dots canonical.

    out = pl.pallas_call(
        mem_net_kernel,
        out_shape=jax.ShapeDtypeStruct((B_pad, d), inp_vector.dtype),
        grid_spec=pltpu.PrefetchScalarGridSpec(
            num_scalar_prefetch=0,
            grid=(n_blocks,),
            in_specs=[
                pl.BlockSpec((bt, d), lambda i: (i, 0)),   # query rows (tiled)
                pl.BlockSpec((d, m), lambda i: (0, 0)),    # memory (resident)
                pl.BlockSpec((m, d), lambda i: (0, 0)),    # memory^T (resident)
            ],
            out_specs=pl.BlockSpec((bt, d), lambda i: (i, 0)),
        ),
        compiler_params=pltpu.CompilerParams(
            dimension_semantics=("parallel",)),
    )(inp_p, mem_vectors, mem_t)

    return out[:B] if B_pad != B else out


def mem_net_forward(inp_vector, mem_vectors, n_hops=2, *, force_pallas=False):
    """inp_vector: (B, d) queries (module uses B=1), mem_vectors: (d, m) -> (B, d)."""
    assert n_hops >= 1, "reference module returns `output` only when n_hops >= 1"
    B, d = inp_vector.shape
    d2, _ = mem_vectors.shape
    assert d == d2

    if B < _PALLAS_MIN_BATCH and not force_pallas:
        return _mem_net_xla(inp_vector, mem_vectors)
    return _mem_net_pallas(inp_vector, mem_vectors)


def mem_net_ref(inp_vector, mem_vectors, n_hops=2):
    output = None
    for _ in range(n_hops):
        scores = inp_vector @ mem_vectors
        mmul = jax.nn.softmax(scores, axis=1)
        output = (mem_vectors @ mmul.T).T
    return output


# ----------------------------- demo / checks ---------------------------------

if __name__ == "__main__":
    embed_dim = 32   # d
    n_vectors = 8    # m
    n_hops = 2       # Mem_net(embed_dim, n_vectors, n_hops); module has no weights

    key = jax.random.PRNGKey(0)
    k1, k2, k3 = jax.random.split(key, 3)

    # Module-faithful shapes: (1, d) query, (d, m) memory.
    inp_vector = jax.random.normal(k1, (1, embed_dim), dtype=jnp.float32)
    mem_vectors = jax.random.normal(k2, (embed_dim, n_vectors), dtype=jnp.float32)

    ref_small = mem_net_ref(inp_vector, mem_vectors, n_hops)

    # Default dispatch at B=1: plain fused XLA (Pallas overhead would dominate).
    out_small = jax.block_until_ready(mem_net_forward(inp_vector, mem_vectors, n_hops))
    assert out_small.shape == (1, embed_dim)
    assert jnp.allclose(out_small, ref_small, atol=1e-5, rtol=1e-5), "mismatch (B=1, xla path)"

    # Same shape forced through the Pallas kernel (padded 8-row tile).
    out_small_pl = jax.block_until_ready(
        mem_net_forward(inp_vector, mem_vectors, n_hops, force_pallas=True))
    assert out_small_pl.shape == (1, embed_dim)
    assert jnp.allclose(out_small_pl, ref_small, atol=1e-5, rtol=1e-5), "mismatch (B=1, pallas)"

    # Batched path: 2 grid steps -> both TensorCores on v7x, pipelined DMA.
    B = 256
    inp_batch = jax.random.normal(k3, (B, embed_dim), dtype=jnp.float32)
    out_b = jax.block_until_ready(mem_net_forward(inp_batch, mem_vectors, n_hops))
    ref_b = mem_net_ref(inp_batch, mem_vectors, n_hops)
    assert out_b.shape == (B, embed_dim)
    assert jnp.allclose(out_b, ref_b, atol=1e-5, rtol=1e-5), "mismatch vs reference (batched)"

    # Ragged batch exercises the cdiv/pad tail handling (no giant single block).
    B2 = 200
    inp_rag = inp_batch[:B2]
    out_r = jax.block_until_ready(mem_net_forward(inp_rag, mem_vectors, n_hops))
    ref_r = mem_net_ref(inp_rag, mem_vectors, n_hops)
    assert out_r.shape == (B2, embed_dim)
    assert jnp.allclose(out_r, ref_r, atol=1e-5, rtol=1e-5), "mismatch vs reference (ragged)"

    print("KERNEL_OK")
</pallas_src>

<mosaic_0001>
module attributes {stable_mosaic.version = 11 : i64} {
  func.func @mem_net_kernel(%arg0: i32, %arg1: memref<8x32xf32, #tpu.memory_space<vmem>>, %arg2: memref<32x8xf32, #tpu.memory_space<vmem>>, %arg3: memref<8x32xf32, #tpu.memory_space<vmem>>, %arg4: memref<8x32xf32, #tpu.memory_space<vmem>>) attributes {dimension_semantics = [#tpu.dimension_semantics<parallel>], iteration_bounds = array<i64: 1>, scalar_prefetch = 0 : i64, scratch_operands = 0 : i64, tpu.core_type = #tpu.core_type<tc>, window_params = [{transform_indices = @transform_0, window_bounds = array<i64: 8, 32>}, {pipeline_mode = #tpu.pipeline_mode<synchronous>, transform_indices = @transform_1, window_bounds = array<i64: 32, 8>}, {pipeline_mode = #tpu.pipeline_mode<synchronous>, transform_indices = @transform_2, window_bounds = array<i64: 8, 32>}, {transform_indices = @transform_3, window_bounds = array<i64: 8, 32>}]} {
    %c0 = arith.constant 0 : index
    %c0_0 = arith.constant 0 : index
    %0 = vector.load %arg1[%c0, %c0_0] : memref<8x32xf32, #tpu.memory_space<vmem>>, vector<8x32xf32>
    %c0_1 = arith.constant 0 : index
    %c0_2 = arith.constant 0 : index
    %1 = vector.load %arg2[%c0_1, %c0_2] : memref<32x8xf32, #tpu.memory_space<vmem>>, vector<32x8xf32>
    %c0_3 = arith.constant 0 : index
    %c0_4 = arith.constant 0 : index
    %2 = vector.load %arg3[%c0_3, %c0_4] : memref<8x32xf32, #tpu.memory_space<vmem>>, vector<8x32xf32>
    %cst = arith.constant dense<0.000000e+00> : vector<8x8xf32>
    %3 = tpu.matmul %0, %1, %cst {dimension_numbers = #tpu.dot_dimension_numbers<[1], [0], [0], [1], [0, 0, 1, 1], [], []>} : vector<8x32xf32>, vector<32x8xf32>, vector<8x8xf32> -> vector<8x8xf32>
    %cst_5 = arith.constant dense<0xFF800000> : vector<8xf32>
    %4 = vector.multi_reduction <maximumf>, %3, %cst_5 [1] : vector<8x8xf32> to vector<8xf32>
    %5 = vector.shape_cast %4 : vector<8xf32> to vector<8x1xf32>
    %6 = vector.broadcast %5 : vector<8x1xf32> to vector<8x8xf32>
    %7 = arith.subf %3, %6 : vector<8x8xf32>
    %8 = math.exp %7 : vector<8x8xf32>
    %cst_6 = arith.constant dense<0.000000e+00> : vector<8xf32>
    %9 = vector.multi_reduction <add>, %8, %cst_6 [1] : vector<8x8xf32> to vector<8xf32>
    %10 = vector.shape_cast %9 : vector<8xf32> to vector<8x1xf32>
    %11 = vector.broadcast %10 : vector<8x1xf32> to vector<8x8xf32>
    %12 = arith.divf %8, %11 : vector<8x8xf32>
    %cst_7 = arith.constant dense<0.000000e+00> : vector<8x32xf32>
    %13 = tpu.matmul %12, %2, %cst_7 {dimension_numbers = #tpu.dot_dimension_numbers<[1], [0], [0], [1], [0, 0, 1, 1], [], []>} : vector<8x8xf32>, vector<8x32xf32>, vector<8x32xf32> -> vector<8x32xf32>
    %c0_8 = arith.constant 0 : index
    %c0_9 = arith.constant 0 : index
    %14 = vector.load %arg4[%c0_8, %c0_9] : memref<8x32xf32, #tpu.memory_space<vmem>>, vector<8x32xf32>
    tpu.vector_store %arg4[%c0_8, %c0_9], %13 {strides = array<i32>} : memref<8x32xf32, #tpu.memory_space<vmem>>, vector<8x32xf32>,
    return
  }
  func.func @transform_0(%arg0: i32) -> (i32, i32) {
    %c0_i32 = arith.constant 0 : i32
    %c0_i32_0 = arith.constant 0 : i32
    return %arg0, %c0_i32 : i32, i32
  }
  func.func @transform_1(%arg0: i32) -> (i32, i32) {
    %c0_i32 = arith.constant 0 : i32
    %c0_i32_0 = arith.constant 0 : i32
    %c0_i32_1 = arith.constant 0 : i32
    return %c0_i32, %c0_i32_0 : i32, i32
  }
  func.func @transform_2(%arg0: i32) -> (i32, i32) {
    %c0_i32 = arith.constant 0 : i32
    %c0_i32_0 = arith.constant 0 : i32
    %c0_i32_1 = arith.constant 0 : i32
    return %c0_i32, %c0_i32_0 : i32, i32
  }
  func.func @transform_3(%arg0: i32) -> (i32, i32) {
    %c0_i32 = arith.constant 0 : i32
    %c0_i32_0 = arith.constant 0 : i32
    return %arg0, %c0_i32 : i32, i32
  }
}

</mosaic_0001>

<bundles_post_ra>
// kernel: tpu_custom_call.1
= control target key start
LH: loop header
LB: loop body
LE: loop exit
PB: predicated region body
PF: predicated region fallthrough
CT: control target
= control target key end

     0   :  { %v258_v3 = vmov 0.0|0.0   ;;  %vm259_vm0 = vmmov 0   ;;  %v260_v6 = vmov 0.0   ;;  %s317_s0 = inlined_call_operand.vmem [shape: f32[8,32], index: 0, kind: input, shape index: {}]   ;;  %s318_s1 = inlined_call_operand.vmem [shape: f32[32,8], index: 1, kind: input, shape index: {}]   ;;  %s319_s2 = inlined_call_operand.vmem [shape: f32[8,32], index: 2, kind: input, shape index: {}]   ;;  %s320_s3 = inlined_call_operand.hbm [shape: f32[8,32], index: 3, kind: output, shape index: {}]  }
   0x1   :  { %v16_v0 = vld [vmem:[%s318_s1] sm:$0xff]  ;;  %v17_v1 = vld [vmem:[%s318_s1 + $0x8] sm:$0xff]  ;;  %v18_v2 = vld [vmem:[%s318_s1 + $0x10] sm:$0xff]  ;;  %220 = vmatprep.subr.bf16.mxu0 %v258_v3  ;;  %212 = vmatprep.mubr.msk.f32.mxu0 %vm259_vm0, %v260_v6 }
   0x2   :  { %v221_v4 = vpack.c.bf16 %v17_v1, %v16_v0  ;;  %v19_v5 = vld [vmem:[%s318_s1 + $0x18] sm:$0xff] }
   0x3   :  { %8 = vsyncpa [#allocation3], 0  ;;  %215 = vmatprep.subr.mxu1 %v260_v6  ;;  %217 = vmatprep.mubr.msk.f32.mxu1 %vm259_vm0, %v260_v6  ;;  %v224_v7 = vpack.c.bf16 %v19_v5, %v18_v2  ;;  %v15_v8 = vld [vmem:[%s317_s0] sm:$0xff]  ;;  %vm21_vm1 = vcmask 261120   ;;  %vm95_vm2 = vcmask 64512   ;;  %s261_s0 = smov [#allocation2]  }
   0x4   :  { %222 = vmatpush3.bf16.msra.mxu0 %v221_v4  ;;  %v20_v17 = vld [vmem:[%s319_s2] sm:$0xff]  ;;  %s187_s23 = sshll.u32 %s261_s0, 4  ;;  %s188_s23 = int_to_ptr.vmem [resolvable:$true] %s187_s23 }
   0x5   :  { %223 = vmatprep.subr.bf16.mxu0 %v258_v3  ;;  %216 = vmatpush3.msra.mxu1 %v20_v17  ;;  %s234_s24 = scalar_lea.vmem %s188_s23, 128  ;;  %p239_p1 = scmp.lt.s32.totalorder %s188_s23, %s188_s23 }
   0x6   :  { %p235_p0 = scmp.ne.s32.totalorder %s188_s23, %s234_s24  ;;  %p240_p2 = scmp.lt.s32.totalorder %s234_s24, %s234_s24 }
   0x8   :  { %225 = vmatpush3.bf16.msra.mxu0 %v224_v7  ;;  %p241_p3 = por %p240_p2, %p239_p1 }
   0xa   :  { %p242_p4 = pnand %p241_p3, %p235_p0 }
   0xb   :  { %213 = vmatmul.mubr.msk.f32.vlgmr.msra.gmra.mrb[0].mxu0 %vm21_vm1, %v15_v8 }
  0xde   :  { %v91_v9 = vpop.f32.mrb[0].mxu0 }
  0xdf   :  { %v214_v10 = vpop.f32.mrb[1].mxu0  ;;  %v96_v11 = vsel %vm95_vm2, %v91_v9, -inf }
  0xe0   :  { %97 = vmax.xlane.f32.xlu0 %v96_v11 }
 0x16d   :  { %v98_v12 = vpop.xlane.xlu0 %97 }
 0x16e   :  { %v99_v13 = vsub.f32 %v91_v9, %v98_v12 }
 0x170   :  { %v100_v14 = vmul.f32 1.442695, %v99_v13 }
 0x172   :  { %230 = vpow2.f32 %v100_v14 }
 0x17c   :  { %v231_v15 = vpop.eup %230 }
 0x17d   :  { %v102_v16 = vsel %vm95_vm2, %v231_v15, 0.0 }
 0x17e   :  { %103 = vadd.xlane.f32.xlu0 %v102_v16 }
 0x20b   :  { %v104_v18 = vpop.xlane.xlu0 %103 }
 0x20c   :  { %232 = vrcp.f32 %v104_v18 }
 0x216   :  { %v233_v19 = vpop.eup %232 }
 0x217   :  { %v106_v20 = vmul.f32 %v233_v19, %v231_v15 }
 0x219   :  { %218 = vmatmul.mubr.msk.f32.vlgmr.msra.gmra.mrb[0].mxu1 %vm95_vm2, %v106_v20 }
 0x2ec   :  { %v176_v21 = vpop.f32.mrb[0].mxu1 }
 0x2ed   :  { %180 = vst.msk [vmem:[#allocation2] sm:$0xff] %vm21_vm1, %v176_v21  ;;  %v219_v22 = vpop.f32.mrb[1].mxu1 }
 0x2ee   :  { %245 = shalt.err (!%p242_p4)
}
 0x2ef   :  { %s246_s26 = scalar_lea.hbm %s320_s3, 128 }
 0x2f0   :  { %p247_p5 = scmp.ne.s32.totalorder %s320_s3, %s246_s26  ;;  %p250_p6 = scmp.lt.u32.totalorder %s246_s26, %s320_s3 }
 0x2f2   :  { %p252_p7 = pnand %p250_p6, %p247_p5 }
 0x2f4   :  { %255 = shalt.err (!%p252_p7)
}
 0x2f5   :  { %190 = dma.vmem_to_hbm [thread:$0]  %s188_s23, 128, %s320_s3, [#allocation3]  }
 0x2f6   :  { %256 = dma.done.wait [#allocation3], 128  }
 0x2f7   :  { %257 = vsyncadd [#allocation3], 4294967168 }
 0x2f8   :  { %194 = vsyncpa [#allocation3], 1 }

</bundles_post_ra>
